<compile_context>
chip_gen: v7x
topology: tpu7x:2x2x1
jax: 0.10.0
libtpu: 0.0.40
codegen_flags: <defaults>
</compile_context>

<pallas_src>
import functools
import math

import jax
import jax.numpy as jnp
from jax.experimental import pallas as pl
from jax.experimental.pallas import tpu as pltpu

_LANE = 128


# ---------------------------------------------------------------------------
# Kernels
# ---------------------------------------------------------------------------

def _conv1x1_stats_kernel(x_ref, w_ref, y_ref, st_ref):
    """y = x @ w (1x1 conv, no bias); per-tile (sum, sum_sq) of y from f32 acc."""
    y = jnp.dot(x_ref[...], w_ref[...], preferred_element_type=jnp.float32)
    y_ref[...] = y.astype(y_ref.dtype)
    st_ref[0, 0:1, :] = jnp.sum(y, axis=0, keepdims=True)
    st_ref[0, 1:2, :] = jnp.sum(y * y, axis=0, keepdims=True)


def _affine_relu_conv1x1_stats_kernel(x_ref, sc_ref, sh_ref, w_ref, y_ref, st_ref):
    """y = relu(x*scale + shift) @ w  (BN*mask folded into scale/shift)."""
    a = jnp.maximum(x_ref[...] * sc_ref[...] + sh_ref[...], 0.0)
    y = jnp.dot(a.astype(jnp.bfloat16), w_ref[...],
                preferred_element_type=jnp.float32)
    y_ref[...] = y.astype(y_ref.dtype)
    st_ref[0, 0:1, :] = jnp.sum(y, axis=0, keepdims=True)
    st_ref[0, 1:2, :] = jnp.sum(y * y, axis=0, keepdims=True)


def _affine_relu_conv3x3_stats_kernel(x_ref, sc_ref, sh_ref, w_ref, b_ref,
                                      y_ref, st_ref, pad_ref, *, stride):
    """Per image: a = relu(x*scale + shift); y = conv3x3(a, stride, pad=1) + b."""
    _, h, w, c = x_ref.shape
    _, ho, wo, co = y_ref.shape

    # Zero only the 1-pixel halo border (4 thin strips); the interior is
    # overwritten below.  NOTE: re-done every grid step on purpose — under
    # megacore "parallel" sharding each TensorCore owns its own scratch, so a
    # program_id==0 hoist would leave cores other than 0 with garbage halos.
    pad_ref[0:1, :, :] = jnp.zeros((1, w + 2, c), pad_ref.dtype)
    pad_ref[h + 1:h + 2, :, :] = jnp.zeros((1, w + 2, c), pad_ref.dtype)
    pad_ref[:, 0:1, :] = jnp.zeros((h + 2, 1, c), pad_ref.dtype)
    pad_ref[:, w + 1:w + 2, :] = jnp.zeros((h + 2, 1, c), pad_ref.dtype)

    # BN1 * mask1 (folded per-channel affine) + ReLU; store bf16 for the MXU.
    a = jnp.maximum(x_ref[0] * sc_ref[...] + sh_ref[...], 0.0)
    pad_ref[1:h + 1, 1:w + 1, :] = a.astype(pad_ref.dtype)

    # 3x3 conv as 9 accumulating MXU matmuls.  After channel padding c >= 128,
    # so K occupancy is already full per tap; this avoids materializing the
    # (ho*wo, 9c) im2col temp and its XLU concat/relayout.
    acc = None
    t = 0
    for dy in range(3):
        for dx in range(3):
            if stride == 1:
                p = pad_ref[dy:dy + ho, dx:dx + wo, :]
            else:
                p = pad_ref[pl.ds(dy, ho, stride), pl.ds(dx, wo, stride), :]
            d = jnp.dot(p.reshape(ho * wo, c), w_ref[t * c:(t + 1) * c, :],
                        preferred_element_type=jnp.float32)
            acc = d if acc is None else acc + d
            t += 1
    y = acc + b_ref[...]                                   # conv2 bias

    y_ref[...] = y.astype(y_ref.dtype).reshape(1, ho, wo, co)
    st_ref[0, 0:1, :] = jnp.sum(y, axis=0, keepdims=True)
    st_ref[0, 1:2, :] = jnp.sum(y * y, axis=0, keepdims=True)


def _affine_add_relu_kernel(x_ref, sc_ref, sh_ref, id_ref, o_ref):
    """out = relu(x*scale + shift + identity)   (BN3*mask3 folded)."""
    o_ref[...] = jnp.maximum(
        x_ref[...] * sc_ref[...] + sh_ref[...] + id_ref[...].astype(jnp.float32),
        0.0).astype(o_ref.dtype)


# ---------------------------------------------------------------------------
# Wrapper helpers
# ---------------------------------------------------------------------------

def _round_up(v, m):
    return (v + m - 1) // m * m


def _pad_last(a, target):
    pad = target - a.shape[-1]
    if pad == 0:
        return a
    return jnp.pad(a, [(0, 0)] * (a.ndim - 1) + [(0, pad)])


def _pad2d(a, rows, cols):
    return jnp.pad(a, ((0, rows - a.shape[0]), (0, cols - a.shape[1])))


@functools.lru_cache(maxsize=None)
def _vmem_cap_bytes():
    """~3/4 of physical VMEM (leave headroom for compiler scratch/semaphores)."""
    try:
        cap = int(pltpu.get_tpu_info().vmem_capacity_bytes)
    except Exception:
        cap = 64 << 20            # conservative fallback (works on all gens)
    return max(int(cap * 3 // 4), 16 << 20)


def _pick_row_tile(m_rows, row_bytes, *, min_steps=4):
    """Largest multiple-of-8 divisor of m_rows within a VMEM byte budget,
    preferring >= min_steps grid steps (double-buffering / megacore)."""
    target = max(min(4 << 20, _vmem_cap_bytes() // 16), 64 << 10)
    budget_rows = int(max(target // max(row_bytes, 1), 8))
    limit = min(m_rows, budget_rows)
    cand_pref, cand_any = None, None
    t = 8
    while t <= limit:
        if m_rows % t == 0:
            cand_any = t
            if m_rows // t >= min_steps:
                cand_pref = t
        t += 8
    if cand_pref is not None:
        return cand_pref
    if cand_any is not None:
        return cand_any
    # TODO(synk): non-multiple-of-8 m_rows would need a cdiv grid + masked tail.
    for t in range(int(limit), 0, -1):
        if m_rows % t == 0:
            return t
    return m_rows


def _vmem_limit(blocks, scratch_bytes=0):
    """Double-buffered block set + scratch + margin, capped generation-aware."""
    nbytes = sum(math.prod(s) * jnp.dtype(d).itemsize for s, d in blocks)
    need = 2 * nbytes + int(scratch_bytes) + (4 << 20)
    return int(min(max(need, 8 << 20), _vmem_cap_bytes()))


def _fold_bn_mask(stats, count, gamma, beta, mask_c, c_pad, eps=1e-5):
    """Fold training-mode BN (from padded sum/sum_sq) and the per-channel mask
    into y -> y*scale + shift.  Padded lanes get mask 0 => scale = shift = 0."""
    s, q = stats[0], stats[1]                               # (c_pad,)
    mean = s / count
    # NOTE: E[x^2]-E[x]^2 in f32; clamped at 0.  For extremely large counts a
    # mean-subtracted two-level combine would be more robust.
    var = jnp.maximum(q / count - mean * mean, 0.0)
    inv = jax.lax.rsqrt(var + eps)
    g = _pad_last(gamma.astype(jnp.float32), c_pad)
    b = _pad_last(beta.astype(jnp.float32), c_pad)
    m = _pad_last(mask_c.astype(jnp.float32), c_pad)
    scale = g * inv * m
    shift = (b - g * inv * mean) * m
    return scale.reshape(1, c_pad), shift.reshape(1, c_pad)


# ---------------------------------------------------------------------------
# Forward
# ---------------------------------------------------------------------------

def masked_bottleneck_forward(x_nchw, params, *, stride=1, eps=1e-5):
    """Masked_Bottleneck forward. x_nchw: (N, Cin, H, W) float32."""
    n, cin, h, w = x_nchw.shape
    cw = params["w1"].shape[0]            # width
    co = params["w3"].shape[0]            # planes * expansion
    ho, wo = h // stride, w // stride

    if stride != 1 or cin != co:
        # TODO(synk): external `downsample` nn.Module not modeled.
        raise NotImplementedError("only the downsample=None identity path is implemented")

    cin_p = _round_up(cin, _LANE)
    cw_p = _round_up(cw, _LANE)
    co_p = _round_up(co, _LANE)           # == cin_p (identity path)

    mask = params["mask"].astype(jnp.float32)
    m1, m2, m3 = mask[:cw], mask[cw:2 * cw], mask[2 * cw:2 * cw + co]

    x_nhwc = jnp.transpose(x_nchw, (0, 2, 3, 1)).astype(jnp.float32)   # (N,H,W,Cin)
    m_rows = n * h * w
    # Channel-padded bf16 input; also reused as the identity shortcut.
    xf = _pad_last(x_nhwc.reshape(m_rows, cin), cin_p).astype(jnp.bfloat16)

    # ---- stage 1: conv1 (1x1, no bias) + BN1 partial stats --------------------
    w1 = _pad2d(params["w1"][:, :, 0, 0].T, cin_p, cw_p).astype(jnp.bfloat16)
    tm = _pick_row_tile(m_rows, cin_p * 2 + cw_p * 2)
    g1 = m_rows // tm
    y1f, ps1 = pl.pallas_call(
        _conv1x1_stats_kernel,
        grid=(g1,),
        in_specs=[pl.BlockSpec((tm, cin_p), lambda i: (i, 0)),
                  pl.BlockSpec((cin_p, cw_p), lambda i: (0, 0))],
        out_specs=[pl.BlockSpec((tm, cw_p), lambda i: (i, 0)),
                   pl.BlockSpec((1, 2, cw_p), lambda i: (i, 0, 0))],
        out_shape=[jax.ShapeDtypeStruct((m_rows, cw_p), jnp.bfloat16),
                   jax.ShapeDtypeStruct((g1, 2, cw_p), jnp.float32)],
        compiler_params=pltpu.CompilerParams(
            dimension_semantics=("parallel",),
            vmem_limit_bytes=_vmem_limit(
                [((tm, cin_p), jnp.bfloat16), ((cin_p, cw_p), jnp.bfloat16),
                 ((tm, cw_p), jnp.bfloat16), ((1, 2, cw_p), jnp.float32)],
                scratch_bytes=tm * cw_p * 4)),
    )(xf, w1)
    sc1, sh1 = _fold_bn_mask(ps1.sum(axis=0), m_rows,
                             params["bn1_gamma"], params["bn1_beta"], m1, cw_p, eps)

    # ---- stage 2: BN1*mask1 + ReLU + conv2 (3x3, pad 1) + BN2 partial stats ---
    y1 = y1f.reshape(n, h, w, cw_p)
    w2 = jnp.transpose(params["w2"], (2, 3, 1, 0))                     # (3,3,Cin,Cout)
    w2 = jnp.pad(w2, ((0, 0), (0, 0), (0, cw_p - cw), (0, cw_p - cw)))
    w2 = w2.reshape(9 * cw_p, cw_p).astype(jnp.bfloat16)
    b2 = _pad_last(params["b2"].reshape(1, cw), cw_p).astype(jnp.float32)
    stage2_scratch = ((h + 2) * (w + 2) * cw_p * 2          # bf16 padded scratch
                      + h * w * cw_p * 4                    # f32 'a' registers
                      + 2 * ho * wo * cw_p * 4)             # f32 accumulator temps
    y2, ps2 = pl.pallas_call(
        functools.partial(_affine_relu_conv3x3_stats_kernel, stride=stride),
        grid=(n,),
        in_specs=[pl.BlockSpec((1, h, w, cw_p), lambda b: (b, 0, 0, 0)),
                  pl.BlockSpec((1, cw_p), lambda b: (0, 0)),
                  pl.BlockSpec((1, cw_p), lambda b: (0, 0)),
                  pl.BlockSpec((9 * cw_p, cw_p), lambda b: (0, 0)),
                  pl.BlockSpec((1, cw_p), lambda b: (0, 0))],
        out_specs=[pl.BlockSpec((1, ho, wo, cw_p), lambda b: (b, 0, 0, 0)),
                   pl.BlockSpec((1, 2, cw_p), lambda b: (b, 0, 0))],
        out_shape=[jax.ShapeDtypeStruct((n, ho, wo, cw_p), jnp.bfloat16),
                   jax.ShapeDtypeStruct((n, 2, cw_p), jnp.float32)],
        scratch_shapes=[pltpu.VMEM((h + 2, w + 2, cw_p), jnp.bfloat16)],
        compiler_params=pltpu.CompilerParams(
            dimension_semantics=("parallel",),
            vmem_limit_bytes=_vmem_limit(
                [((1, h, w, cw_p), jnp.bfloat16), ((9 * cw_p, cw_p), jnp.bfloat16),
                 ((1, ho, wo, cw_p), jnp.bfloat16), ((1, 2, cw_p), jnp.float32)],
                scratch_bytes=stage2_scratch)),
    )(y1, sc1, sh1, w2, b2)
    m2_rows = n * ho * wo
    sc2, sh2 = _fold_bn_mask(ps2.sum(axis=0), m2_rows,
                             params["bn2_gamma"], params["bn2_beta"], m2, cw_p, eps)

    # ---- stage 3: BN2*mask2 + ReLU + conv3 (1x1, no bias) + BN3 partial stats -
    y2f = y2.reshape(m2_rows, cw_p)
    w3 = _pad2d(params["w3"][:, :, 0, 0].T, cw_p, co_p).astype(jnp.bfloat16)
    tm2 = _pick_row_tile(m2_rows, cw_p * 2 + co_p * 2)
    g3 = m2_rows // tm2
    y3f, ps3 = pl.pallas_call(
        _affine_relu_conv1x1_stats_kernel,
        grid=(g3,),
        in_specs=[pl.BlockSpec((tm2, cw_p), lambda i: (i, 0)),
                  pl.BlockSpec((1, cw_p), lambda i: (0, 0)),
                  pl.BlockSpec((1, cw_p), lambda i: (0, 0)),
                  pl.BlockSpec((cw_p, co_p), lambda i: (0, 0))],
        out_specs=[pl.BlockSpec((tm2, co_p), lambda i: (i, 0)),
                   pl.BlockSpec((1, 2, co_p), lambda i: (i, 0, 0))],
        out_shape=[jax.ShapeDtypeStruct((m2_rows, co_p), jnp.bfloat16),
                   jax.ShapeDtypeStruct((g3, 2, co_p), jnp.float32)],
        compiler_params=pltpu.CompilerParams(
            dimension_semantics=("parallel",),
            vmem_limit_bytes=_vmem_limit(
                [((tm2, cw_p), jnp.bfloat16), ((cw_p, co_p), jnp.bfloat16),
                 ((tm2, co_p), jnp.bfloat16), ((1, 2, co_p), jnp.float32)],
                scratch_bytes=2 * tm2 * max(cw_p, co_p) * 4)),
    )(y2f, sc2, sh2, w3)
    sc3, sh3 = _fold_bn_mask(ps3.sum(axis=0), m2_rows,
                             params["bn3_gamma"], params["bn3_beta"], m3, co_p, eps)

    # ---- stage 4: BN3*mask3 + identity add + ReLU -----------------------------
    # Identity shortcut reuses the already channel-padded bf16 input (cin_p==co_p).
    out_f = pl.pallas_call(
        _affine_add_relu_kernel,
        grid=(g3,),
        in_specs=[pl.BlockSpec((tm2, co_p), lambda i: (i, 0)),
                  pl.BlockSpec((1, co_p), lambda i: (0, 0)),
                  pl.BlockSpec((1, co_p), lambda i: (0, 0)),
                  pl.BlockSpec((tm2, co_p), lambda i: (i, 0))],
        out_specs=pl.BlockSpec((tm2, co_p), lambda i: (i, 0)),
        out_shape=jax.ShapeDtypeStruct((m2_rows, co_p), jnp.float32),
        compiler_params=pltpu.CompilerParams(
            dimension_semantics=("parallel",),
            vmem_limit_bytes=_vmem_limit(
                [((tm2, co_p), jnp.bfloat16)] * 2 + [((tm2, co_p), jnp.float32)],
                scratch_bytes=tm2 * co_p * 4)),
    )(y3f, sc3, sh3, xf)

    out = out_f[:, :co].reshape(n, ho, wo, co)
    return jnp.transpose(out, (0, 3, 1, 2)).astype(x_nchw.dtype)       # NHWC -> NCHW


# ---------------------------------------------------------------------------
# Pure-JAX reference (NCHW), matching the PyTorch forward in training mode.
# ---------------------------------------------------------------------------

def _reference(x, params, *, stride=1):
    def bn(t, g, b, eps=1e-5):
        mean = jnp.mean(t, axis=(0, 2, 3), keepdims=True)
        var = jnp.mean(jnp.square(t - mean), axis=(0, 2, 3), keepdims=True)
        return g.reshape(1, -1, 1, 1) * (t - mean) * jax.lax.rsqrt(var + eps) \
            + b.reshape(1, -1, 1, 1)

    def conv(t, wgt, s, pad, bias=None):
        y = jax.lax.conv_general_dilated(
            t, wgt, (s, s), [(pad, pad), (pad, pad)],
            dimension_numbers=("NCHW", "OIHW", "NCHW"))
        if bias is not None:
            y = y + bias.reshape(1, -1, 1, 1)
        return y

    cw = params["w1"].shape[0]
    co = params["w3"].shape[0]
    mask = params["mask"]

    out = conv(x, params["w1"], 1, 0)
    out = bn(out, params["bn1_gamma"], params["bn1_beta"]) * mask[:cw].reshape(1, cw, 1, 1)
    out = jax.nn.relu(out)
    out = conv(out, params["w2"], stride, 1, params["b2"])
    out = bn(out, params["bn2_gamma"], params["bn2_beta"]) * mask[cw:2 * cw].reshape(1, cw, 1, 1)
    out = jax.nn.relu(out)
    out = conv(out, params["w3"], 1, 0)
    out = bn(out, params["bn3_gamma"], params["bn3_beta"]) * \
        mask[2 * cw:2 * cw + co].reshape(1, co, 1, 1)
    identity = x                                       # downsample is None
    return jax.nn.relu(out + identity)


# ---------------------------------------------------------------------------
# Demo / self-test
# ---------------------------------------------------------------------------

if __name__ == "__main__":
    # Masked_Bottleneck(inplanes=16, planes=4, stride=1, downsample=None, exp_s=16)
    # -> width = planes = 4, output channels = planes * expansion = 16.
    N, INPLANES, PLANES, STRIDE, EXP_S = 2, 16, 4, 1, 16
    WIDTH = PLANES
    COUT = PLANES * 4
    H = W = EXP_S

    key = jax.random.PRNGKey(0)
    ks = jax.random.split(key, 12)
    params = {
        "w1": 0.1 * jax.random.normal(ks[0], (WIDTH, INPLANES, 1, 1), jnp.float32),
        "bn1_gamma": 1.0 + 0.1 * jax.random.normal(ks[1], (WIDTH,), jnp.float32),
        "bn1_beta": 0.1 * jax.random.normal(ks[2], (WIDTH,), jnp.float32),
        "w2": 0.1 * jax.random.normal(ks[3], (WIDTH, WIDTH, 3, 3), jnp.float32),
        "b2": 0.1 * jax.random.normal(ks[4], (WIDTH,), jnp.float32),
        "bn2_gamma": 1.0 + 0.1 * jax.random.normal(ks[5], (WIDTH,), jnp.float32),
        "bn2_beta": 0.1 * jax.random.normal(ks[6], (WIDTH,), jnp.float32),
        "w3": 0.1 * jax.random.normal(ks[7], (COUT, WIDTH, 1, 1), jnp.float32),
        "bn3_gamma": 1.0 + 0.1 * jax.random.normal(ks[8], (COUT,), jnp.float32),
        "bn3_beta": 0.1 * jax.random.normal(ks[9], (COUT,), jnp.float32),
        "mask": jax.random.uniform(ks[10], (2 * WIDTH + COUT,), jnp.float32),
    }
    x = jax.random.normal(ks[11], (N, INPLANES, H, W), jnp.float32)

    out = jax.block_until_ready(masked_bottleneck_forward(x, params, stride=STRIDE))
    ref = jax.block_until_ready(_reference(x, params, stride=STRIDE))

    assert out.shape == (N, COUT, H // STRIDE, W // STRIDE), out.shape
    max_err = jnp.max(jnp.abs(out - ref))
    assert jnp.allclose(out, ref, rtol=5e-2, atol=5e-2), f"max abs diff {max_err}"

    print("KERNEL_OK")
</pallas_src>

<mosaic_0001>
module attributes {stable_mosaic.version = 11 : i64} {
  func.func @_conv1x1_stats_kernel(%arg0: i32, %arg1: memref<128x128xbf16, #tpu.memory_space<vmem>>, %arg2: memref<128x128xbf16, #tpu.memory_space<vmem>>, %arg3: memref<128x128xbf16, #tpu.memory_space<vmem>>, %arg4: memref<1x2x128xf32, #tpu.memory_space<vmem>>) attributes {dimension_semantics = [#tpu.dimension_semantics<parallel>], iteration_bounds = array<i64: 4>, scalar_prefetch = 0 : i64, scratch_operands = 0 : i64, tpu.core_type = #tpu.core_type<tc>, window_params = [{transform_indices = @transform_0, window_bounds = array<i64: 128, 128>}, {pipeline_mode = #tpu.pipeline_mode<synchronous>, transform_indices = @transform_1, window_bounds = array<i64: 128, 128>}, {transform_indices = @transform_2, window_bounds = array<i64: 128, 128>}, {transform_indices = @transform_3, window_bounds = array<i64: 1, 2, 128>}]} {
    %c0 = arith.constant 0 : index
    %c0_0 = arith.constant 0 : index
    %0 = vector.load %arg1[%c0, %c0_0] : memref<128x128xbf16, #tpu.memory_space<vmem>>, vector<128x128xbf16>
    %c0_1 = arith.constant 0 : index
    %c0_2 = arith.constant 0 : index
    %1 = vector.load %arg2[%c0_1, %c0_2] : memref<128x128xbf16, #tpu.memory_space<vmem>>, vector<128x128xbf16>
    %cst = arith.constant dense<0.000000e+00> : vector<128x128xf32>
    %2 = tpu.matmul %0, %1, %cst {dimension_numbers = #tpu.dot_dimension_numbers<[1], [0], [0], [1], [0, 0, 1, 1], [], []>} : vector<128x128xbf16>, vector<128x128xbf16>, vector<128x128xf32> -> vector<128x128xf32>
    %3 = arith.truncf %2 : vector<128x128xf32> to vector<128x128xbf16>
    %c0_3 = arith.constant 0 : index
    %c0_4 = arith.constant 0 : index
    %4 = vector.load %arg3[%c0_3, %c0_4] : memref<128x128xbf16, #tpu.memory_space<vmem>>, vector<128x128xbf16>
    tpu.vector_store %arg3[%c0_3, %c0_4], %3 {strides = array<i32>} : memref<128x128xbf16, #tpu.memory_space<vmem>>, vector<128x128xbf16>,
    %cst_5 = arith.constant dense<0.000000e+00> : vector<128xf32>
    %5 = vector.multi_reduction <add>, %2, %cst_5 [0] : vector<128x128xf32> to vector<128xf32>
    %6 = vector.shape_cast %5 : vector<128xf32> to vector<1x128xf32>
    %c0_6 = arith.constant 0 : index
    %c0_7 = arith.constant 0 : index
    %c0_8 = arith.constant 0 : index
    %7 = vector.load %arg4[%c0_6, %c0_7, %c0_8] : memref<1x2x128xf32, #tpu.memory_space<vmem>>, vector<1x1x128xf32>
    %8 = vector.shape_cast %7 : vector<1x1x128xf32> to vector<1x128xf32>
    %9 = vector.shape_cast %6 : vector<1x128xf32> to vector<1x1x128xf32>
    tpu.vector_store %arg4[%c0_6, %c0_7, %c0_8], %9 {strides = array<i32>} : memref<1x2x128xf32, #tpu.memory_space<vmem>>, vector<1x1x128xf32>,
    %10 = arith.mulf %2, %2 : vector<128x128xf32>
    %cst_9 = arith.constant dense<0.000000e+00> : vector<128xf32>
    %11 = vector.multi_reduction <add>, %10, %cst_9 [0] : vector<128x128xf32> to vector<128xf32>
    %12 = vector.shape_cast %11 : vector<128xf32> to vector<1x128xf32>
    %c0_10 = arith.constant 0 : index
    %c1 = arith.constant 1 : index
    %c0_11 = arith.constant 0 : index
    %13 = vector.load %arg4[%c0_10, %c1, %c0_11] : memref<1x2x128xf32, #tpu.memory_space<vmem>>, vector<1x1x128xf32>
    %14 = vector.shape_cast %13 : vector<1x1x128xf32> to vector<1x128xf32>
    %15 = vector.shape_cast %12 : vector<1x128xf32> to vector<1x1x128xf32>
    tpu.vector_store %arg4[%c0_10, %c1, %c0_11], %15 {strides = array<i32>} : memref<1x2x128xf32, #tpu.memory_space<vmem>>, vector<1x1x128xf32>,
    return
  }
  func.func @transform_0(%arg0: i32) -> (i32, i32) {
    %c0_i32 = arith.constant 0 : i32
    %c0_i32_0 = arith.constant 0 : i32
    return %arg0, %c0_i32 : i32, i32
  }
  func.func @transform_1(%arg0: i32) -> (i32, i32) {
    %c0_i32 = arith.constant 0 : i32
    %c0_i32_0 = arith.constant 0 : i32
    %c0_i32_1 = arith.constant 0 : i32
    return %c0_i32, %c0_i32_0 : i32, i32
  }
  func.func @transform_2(%arg0: i32) -> (i32, i32) {
    %c0_i32 = arith.constant 0 : i32
    %c0_i32_0 = arith.constant 0 : i32
    return %arg0, %c0_i32 : i32, i32
  }
  func.func @transform_3(%arg0: i32) -> (i32, i32, i32) {
    %c0_i32 = arith.constant 0 : i32
    %c0_i32_0 = arith.constant 0 : i32
    %c0_i32_1 = arith.constant 0 : i32
    return %arg0, %c0_i32, %c0_i32_0 : i32, i32, i32
  }
}

</mosaic_0001>

<bundles_post_ra>
// kernel: tpu_custom_call.1
= control target key start
LH: loop header
LB: loop body
LE: loop exit
PB: predicated region body
PF: predicated region fallthrough
CT: control target
= control target key end

     0   :  { %9 = vsyncpa [#allocation3], 0  ;;  %s1484_s0 = inlined_call_operand.hbm [shape: bf16[512,128], index: 0, kind: input, shape index: {}]   ;;  %s1485_s1 = inlined_call_operand.hbm [shape: bf16[128,128], index: 1, kind: input, shape index: {}]   ;;  %s1486_s2 = inlined_call_operand.hbm [shape: bf16[512,128], index: 2, kind: output, shape index: {0}]   ;;  %s1487_s3 = inlined_call_operand.hbm [shape: f32[4,2,128], index: 3, kind: output, shape index: {1}]  }
   0x1   :  { %11 = vsyncpa [#allocation3 + $0x1], 0 }
   0x2   :  { %12 = vsyncpa [#allocation6], 0 }
   0x3   :  { %13 = vsyncpa [#allocation4], 0 }
   0x4   :  { %15 = vsyncpa [#allocation4 + $0x1], 0 }
   0x5   :  { %16 = vsyncpa [#allocation9], 0 }
   0x6   :  { %18 = vsyncpa [#allocation9 + $0x1], 0  ;;  %s1182_s12 = smov 0   ;;  %s1184_s13 = smov 0  }
   0x7   :  { %s1186_s14 = smov 0   ;;  %s1188_s15 = smov 0  }
   0x8 LB: > { %s1203_s16 = sadd.s32 4294967295, %s1152_s15   ;;  %s730_s17 = sadd.s32 4294967294, %s1152_s15   ;;  %s1152_s15 = sphi %s1188_s15, %s1506_s15   ;;  %s1148_s14 = sphi %s1186_s14, %s1505_s14   ;;  %s1144_s13 = sphi %s1184_s13, %s1504_s13   ;;  %s1140_s12 = sphi %s1182_s12, %s1503_s12  }
   0x9   : > { %p44_p0 = scmp.ne.s32.totalorder %s1144_s13, %s1140_s12  ;;  %p1488_p1 = scmp.eq.s32.totalorder %s1203_s16, 0 }
   0xa   : > { %p95_p3 = scmp.eq.s32.totalorder %s730_s17, 3  ;;  %p731_p5 = scmp.ge.s32.totalorder %s1152_s15, 1 }
   0xb   : > { %p1212_p4 = por %p1488_p1, %p44_p0  ;;  %p128_p7 = scmp.lt.s32.totalorder %s1152_s15, 5 }
   0xc   : > { %p1217_p6 = por %p95_p3, %p44_p0  ;;  %s1154_s21 = smov [#allocation5]  }
   0xd   : > { %s1491_s18 = scalar_select %p1212_p4, 1, 0 }
   0xe   : > { %s1492_s19 = scalar_select %p1217_p6, 1, 0 }
   0xf   : > { %p1222_p8 = pnand %p731_p5, %p128_p7  ;;  %s140_s22 = sshll.u32 %s1154_s21, 4  ;;  %s141_s22 = int_to_ptr.vmem [resolvable:$true] %s140_s22 }
  0x10   : > { %s1235_s24 = sadd.s32 1, %s1152_s15   ;;  %s31_s25 = sadd.s32 1, %s1148_s14 }
  0x11   : > { %s1493_s20 = scalar_select %p1222_p8, 1, 0 }
  0x12   : > { %p920_p9 = pneg %p1222_p8  ;;  %s28_s26 = ssub.s32 %s1152_s15, %s1235_s24 }
  0x13   : > { %s992_s29 = scalar_lea.hbm %s1485_s1, 1024 }
  0x14   : > { %p1230_p10 = pnand %p920_p9, %p1488_p1  ;;  %p993_p11 = scmp.ne.s32.totalorder %s1485_s1, %s992_s29 }
  0x15   : > { %p999_p3 = scmp.lt.u32.totalorder %s992_s29, %s1485_s1 }
  0x16   : > { %p994_p12 = pneg %p1230_p10 }
  0x18   : > { %p995_p13 = pnand %p994_p12, %p993_p11 }
  0x1a   : > { %p996_p0 = pneg %p995_p13 }
  0x1c   : > { %p1001_p5 = pnand %p999_p3, %p996_p0 }
  0x1e   : > { %1004 = shalt.err (!%p1001_p5)
}
  0x1f   : > { %s1005_s7 = scalar_lea.vmem %s141_s22, 1024  ;;  %p1013_p2 = scmp.lt.s32.totalorder %s141_s22, %s141_s22 }
  0x20   : > { %p1006_p7 = scmp.ne.s32.totalorder %s141_s22, %s1005_s7  ;;  %p1014_p6 = scmp.lt.s32.totalorder %s1005_s7, %s1005_s7 }
  0x22   : > { %p1008_p9 = pnand %p1006_p7, %p994_p12  ;;  %p1015_p4 = por %p1014_p6, %p1013_p2 }
  0x24   : > { %p1009_p1 = pneg %p1008_p9 }
  0x26   : > { %p1016_p8 = pnand %p1015_p4, %p1009_p1 }
  0x28   : > { %1019 = shalt.err (!%p1016_p8)
}
  0x29   : > { %s1155_s8 = smov 64   ;;  %s1156_s9 = smov 4  }
  0x2a   : > { %923 = dma.hbm_to_vmem [thread:$0]  (!%p1230_p10), %s1485_s1, 1024, %s141_s22, [#allocation6], %s1155_s8, %s1155_s8, %s1156_s9  }
  0x2b   : > { %p29_p1 = scmp.eq.s32.totalorder %s28_s26, 0  ;;  %p38_p2 = scmp.ne.s32.totalorder %s1148_s14, %s1144_s13 }
  0x2c   : > { %p39_p4 = scmp.eq.s32.totalorder %s1152_s15, 0  ;;  %p936_p6 = scmp.lt.s32.totalorder %s1152_s15, 4 }
  0x2d   : > { %s1264_s17 = scalar_select %p29_p1, %s1148_s14, %s31_s25  }
  0x2e   : > { %p40_p8 = por %p39_p4, %p38_p2  ;;  %p1495_p11 = scmp.eq.s32.totalorder %s1203_s16, 3 }
  0x2f   : > { %s154_s23 = sand.u32 1, %s1148_s14   ;;  %s781_s27 = sshll.u32 %s1152_s15, 10 }
  0x30   : > { %p1268_p12 = por %p1495_p11, %p38_p2  ;;  %s734_s28 = sshll.u32 %s154_s23, 6 }
  0x31   : > { %s1277_s4 = scalar_lea.hbm %s1484_s0, %s781_s27  ;;  %s158_s22 = scalar_lea.vmem [#allocation2], %s734_s28 }
  0x32   : > { %s165_s25 = sshll.u32 %s158_s22, 4  ;;  %p1279_p10 = pnand %p936_p6, %p40_p8  ;;  %s1283_s25 = int_to_ptr.vmem [resolvable:$true] %s165_s25 }
  0x33   : > { %s1285_s5 = scalar_lea.sflag [#allocation3], %s154_s23  ;;  %s1020_s6 = scalar_lea.hbm %s1277_s4, 1024 }
  0x34   : > { %p1021_p13 = scmp.ne.s32.totalorder %s1277_s4, %s1020_s6  ;;  %p1022_p0 = pneg %p1279_p10 }
  0x35   : > { %s1025_s11 = scalar_lea.hbm %s1484_s0, 4096  ;;  %p1026_p7 = scmp.lt.u32.totalorder %s1277_s4, %s1484_s0 }
  0x36   : > { %p1023_p3 = pnand %p1022_p0, %p1021_p13  ;;  %p1027_p9 = scmp.lt.u32.totalorder %s1025_s11, %s1020_s6 }
  0x37   : > { %p1029_p2 = scmp.lt.u32.totalorder %s1020_s6, %s1277_s4 }
  0x38   : > { %p1024_p5 = pneg %p1023_p3  ;;  %p1028_p1 = por %p1027_p9, %p1026_p7 }
  0x3a   : > { %p1030_p4 = por %p1029_p2, %p1028_p1 }
  0x3c   : > { %p1031_p6 = pnand %p1030_p4, %p1024_p5 }
  0x3e   : > { %1034 = shalt.err (!%p1031_p6)
}
  0x3f   : > { %s1035_s23 = scalar_lea.vmem %s1283_s25, 1024  ;;  %s1157_s29 = smov [#allocation2]  }
  0x40   : > { %p1036_p8 = scmp.ne.s32.totalorder %s1283_s25, %s1035_s23  ;;  %s1040_s30 = sshll.u32 %s1157_s29, 4  ;;  %s1041_s30 = int_to_ptr.vmem [resolvable:$false] %s1040_s30 }
  0x41   : > { %s1042_s22 = scalar_lea.vmem %s1041_s30, 2048  ;;  %p1043_p3 = scmp.lt.s32.totalorder %s1283_s25, %s1041_s30 }
  0x42   : > { %p1038_p11 = pnand %p1036_p8, %p1022_p0  ;;  %p1044_p7 = scmp.lt.s32.totalorder %s1042_s22, %s1035_s23 }
  0x44   : > { %p1039_p13 = pneg %p1038_p11  ;;  %p1045_p9 = por %p1044_p7, %p1043_p3 }
  0x46   : > { %p1046_p1 = pnand %p1045_p9, %p1039_p13 }
  0x48   : > { %1049 = shalt.err (!%p1046_p1)
}
  0x49   : > { %927 = dma.hbm_to_vmem [thread:$0]  (!%p1279_p10), %s1277_s4, 1024, %s1283_s25, %s1285_s5, %s1155_s8, %s1155_s8, %s1156_s9  }
  0x4a   : > { %p1498_p0 = scmp.ne.s32.totalorder %s1493_s20, 0 }
  0x4b   : > { %s1319_s6 = sand.u32 (!%p1498_p0), 1, %s1144_s13   ;;  %p1499_p5 = scmp.ne.s32.totalorder (!%p1498_p0), %s1491_s18, 0 }
  0x4c   : > { %177 = sbr.rel (%p1498_p0) target bundleno = 404 (0x194), region = 28  ;;  %s738_s7 = sshll.u32 (!%p1498_p0), %s1319_s6, 6 }
  0x4d   : > { %s180_s10 = scalar_lea.sflag (!%p1498_p0), [#allocation3], %s1319_s6  ;;  %s1325_s26 = scalar_lea.vmem (!%p1498_p0), [#allocation2], %s738_s7 }
  0x53   : > { %1123 = dma.done.wait (%p1499_p5), %s180_s10, 1024  }
  0x54   : > { %1125 = vsyncadd (%p1499_p5), %s180_s10, 4294966272  ;;  %p1500_p10 = scmp.eq.s32.totalorder %s1203_s16, 0 }
  0x56   : > { %1127 = dma.done.wait (%p1500_p10), [#allocation6], 1024   ;;  %p1501_p2 = pmov %p1500_p10 }
  0x57   : > { %v976_v0 = vld [vmem:[#allocation5] sm:$0xff]   ;;  %v977_v1 = vld [vmem:[#allocation5 + $0x8] sm:$0xff]   ;;  %v978_v2 = vld [vmem:[#allocation5 + $0x10] sm:$0xff]   ;;  %s1357_s18 = scalar_lea.vmem [#allocation7], %s738_s7  ;;  %s798_s8 = sshll.u32 %s1203_s16, 10 }
  0x58   : > { %1129 = vsyncadd (%p1501_p2), [#allocation6], 4294966272  ;;  %862 = vmatprep.subr.bf16.mxu0 %v976_v0  ;;  %894 = vmatprep.subr.bf16.mxu1 %v976_v0  ;;  %v979_v3 = vld [vmem:[#allocation5 + $0x18] sm:$0xff]   ;;  %v984_v4 = vld [vmem:[%s1325_s26] sm:$0xff]   ;;  %s602_s20 = sshll.u32 %s1357_s18, 4  ;;  %s1378_s25 = scalar_lea.hbm %s1486_s2, %s798_s8  ;;  %s1380_s20 = int_to_ptr.vmem [resolvable:$true] %s602_s20 }
  0x59   : > { %863 = vmatpush3.bf16.msra.mxu0 %v976_v0  ;;  %902 = vmatpush3.bf16.msra.mxu1 %v976_v0  ;;  %v980_v5 = vld [vmem:[#allocation5 + $0x20] sm:$0xff]   ;;  %v981_v7 = vld [vmem:[#allocation5 + $0x28] sm:$0xff]   ;;  %v982_v8 = vld [vmem:[#allocation5 + $0x30] sm:$0xff]   ;;  %s584_s5 = scalar_lea.sflag [#allocation4], %s1319_s6  ;;  %s1050_s11 = scalar_lea.vmem %s1380_s20, 1024 }
  0x5a   : > { %864 = vmatprep.subr.bf16.mxu0 %v977_v1  ;;  %895 = vmatprep.subr.bf16.mxu1 %v977_v1  ;;  %v988_v6 = vld [vmem:[%s1325_s26 + $0x20] sm:$0xff]   ;;  %v983_v9 = vld [vmem:[#allocation5 + $0x38] sm:$0xff]   ;;  %v985_v10 = vld [vmem:[%s1325_s26 + $0x8] sm:$0xff]   ;;  %p1051_p4 = scmp.ne.s32.totalorder %s1380_s20, %s1050_s11  ;;  %s1158_s27 = smov [#allocation7]  }
  0x5b   : > { %878 = vmatprep.mubr.bf16.mxu0 %v984_v4  ;;  %886 = vmatprep.mubr.bf16.mxu1 %v988_v6  ;;  %v989_v11 = vld [vmem:[%s1325_s26 + $0x28] sm:$0xff]   ;;  %v986_v12 = vld [vmem:[%s1325_s26 + $0x10] sm:$0xff]   ;;  %v987_v14 = vld [vmem:[%s1325_s26 + $0x18] sm:$0xff]   ;;  %s1054_s28 = sshll.u32 %s1158_s27, 4  ;;  %s1055_s28 = int_to_ptr.vmem [resolvable:$false] %s1054_s28 }
  0x5c   : > { %v990_v13 = vld [vmem:[%s1325_s26 + $0x30] sm:$0xff]   ;;  %v991_v15 = vld [vmem:[%s1325_s26 + $0x38] sm:$0xff]   ;;  %p1052_p6 = pnand %p1051_p4, %p1268_p12  ;;  %s1056_s23 = scalar_lea.vmem %s1055_s28, 2048 }
  0x5d   : > { %865 = vmatpush3.bf16.msra.mxu0 %v977_v1  ;;  %903 = vmatpush3.bf16.msra.mxu1 %v977_v1  ;;  %p1057_p11 = scmp.lt.s32.totalorder %s1380_s20, %s1055_s28  ;;  %p1058_p13 = scmp.lt.s32.totalorder %s1056_s23, %s1050_s11 }
  0x5e   : > { %866 = vmatprep.subr.bf16.mxu0 %v978_v2  ;;  %896 = vmatprep.subr.bf16.mxu1 %v978_v2  ;;  %p1053_p8 = pneg %p1052_p6 }
  0x5f   : > { %p1059_p3 = por %p1058_p13, %p1057_p11 }
  0x61   : > { %867 = vmatpush3.bf16.msra.mxu0 %v978_v2  ;;  %904 = vmatpush3.bf16.msra.mxu1 %v978_v2  ;;  %p1060_p7 = pnand %p1059_p3, %p1053_p8 }
  0x62   : > { %868 = vmatprep.subr.bf16.mxu0 %v979_v3  ;;  %897 = vmatprep.subr.bf16.mxu1 %v979_v3 }
  0x65   : > { %869 = vmatpush3.bf16.msra.mxu0 %v979_v3  ;;  %905 = vmatpush3.bf16.msra.mxu1 %v979_v3 }
  0x66   : > { %870 = vmatprep.subr.bf16.mxu0 %v980_v5  ;;  %898 = vmatprep.subr.bf16.mxu1 %v980_v5 }
  0x69   : > { %871 = vmatpush3.bf16.msra.mxu0 %v980_v5  ;;  %906 = vmatpush3.bf16.msra.mxu1 %v980_v5 }
  0x6a   : > { %872 = vmatprep.subr.bf16.mxu0 %v981_v7  ;;  %899 = vmatprep.subr.bf16.mxu1 %v981_v7 }
  0x6d   : > { %873 = vmatpush3.bf16.msra.mxu0 %v981_v7  ;;  %907 = vmatpush3.bf16.msra.mxu1 %v981_v7 }
  0x6e   : > { %874 = vmatprep.subr.bf16.mxu0 %v982_v8  ;;  %900 = vmatprep.subr.bf16.mxu1 %v982_v8 }
  0x71   : > { %875 = vmatpush3.bf16.msra.mxu0 %v982_v8  ;;  %908 = vmatpush3.bf16.msra.mxu1 %v982_v8 }
  0x72   : > { %876 = vmatprep.subr.bf16.mxu0 %v983_v9  ;;  %901 = vmatprep.subr.bf16.mxu1 %v983_v9 }
  0x75   : > { %877 = vmatpush3.bf16.msra.mxu0 %v983_v9  ;;  %909 = vmatpush3.bf16.msra.mxu1 %v983_v9 }
  0x78   : > { %879 = vmatmul.mubr.bf16.vlgmr.msra.gmra.mrb[0].mxu0 %v985_v10  ;;  %887 = vmatmul.mubr.bf16.vlgmr.msra.gmra.mrb[0].mxu1 %v989_v11 }
  0x79   : > { %882 = vmatprep.mubr.bf16.mxu0 %v986_v12  ;;  %890 = vmatprep.mubr.bf16.mxu1 %v990_v13 }
  0x80   : > { %883 = vmatmul.mubr.bf16.gmra.mrb[4].mxu0 %v987_v14  ;;  %891 = vmatmul.mubr.bf16.gmra.mrb[4].mxu1 %v991_v15 }
 0x14b   : > { %v880_v16 = vpop.f32.mrb[0].mxu0  ;;  %v1343_v17 = vpop.f32.mrb[0].mxu1 }
 0x14c   : > { %v380_v18 = vpop.f32.mrb[1].mxu0  ;;  %v1345_v19 = vpop.f32.mrb[1].mxu1  ;;  %v547_v31 = vmul.f32 %v880_v16, %v880_v16 }
 0x14d   : > { %v881_v20 = vpop.f32.mrb[2].mxu0  ;;  %v1347_v21 = vpop.f32.mrb[2].mxu1  ;;  %v545_v22 = vmul.f32 %v380_v18, %v380_v18  ;;  %v553_v61 = vmul.f32 %v1345_v19, %v1345_v19 }
 0x14e   : > { %v807_v23 = vpack.c.bf16 %v881_v20, %v880_v16  ;;  %v383_v24 = vpop.f32.mrb[3].mxu0  ;;  %v827_v25 = vpack.c.bf16 %v1347_v21, %v1343_v17  ;;  %v1351_v26 = vpop.f32.mrb[3].mxu1  ;;  %v548_v34 = vmul.f32 %v881_v20, %v881_v20 }
 0x14f   : > { %v802_v27 = vpack.c.bf16 %v383_v24, %v380_v18  ;;  %v523_v28 = vadd.f32 %v383_v24, %v380_v18  ;;  %v546_v29 = vmul.f32 %v383_v24, %v383_v24  ;;  %v822_v30 = vpack.c.bf16 %v1351_v26, %v1345_v19 }
 0x150   : > { %839 = vst [vmem:[%s1357_s18 + $0x8] sm:$0xff] %v807_v23   ;;  %843 = vst [vmem:[%s1357_s18 + $0x28] sm:$0xff] %v827_v25  }
 0x151   : > { %803 = vst [vmem:[%s1357_s18] sm:$0xff] %v802_v27   ;;  %v524_v32 = vadd.f32 %v880_v16, %v523_v28  ;;  %v561_v33 = vadd.f32 %v546_v29, %v545_v22  ;;  %842 = vst [vmem:[%s1357_s18 + $0x20] sm:$0xff] %v822_v30  }
 0x153   : > { %v562_v35 = vadd.f32 %v561_v33, %v547_v31  ;;  %v884_v36 = vpop.f32.mrb[4].mxu0  ;;  %v525_v37 = vadd.f32 %v881_v20, %v524_v32  ;;  %v1363_v38 = vpop.f32.mrb[4].mxu1 }
 0x154   : > { %v396_v39 = vpop.f32.mrb[5].mxu0  ;;  %v1366_v40 = vpop.f32.mrb[5].mxu1  ;;  %v551_v55 = vmul.f32 %v884_v36, %v884_v36 }
 0x155   : > { %v526_v41 = vadd.f32 %v525_v37, %v396_v39  ;;  %v549_v42 = vmul.f32 %v396_v39, %v396_v39  ;;  %v563_v43 = vadd.f32 %v562_v35, %v548_v34  ;;  %v885_v44 = vpop.f32.mrb[6].mxu0  ;;  %v1369_v45 = vpop.f32.mrb[6].mxu1 }
 0x156   : > { %v817_v46 = vpack.c.bf16 %v885_v44, %v884_v36  ;;  %v399_v47 = vpop.f32.mrb[7].mxu0  ;;  %v837_v48 = vpack.c.bf16 %v1369_v45, %v1363_v38  ;;  %v1373_v49 = vpop.f32.mrb[7].mxu1  ;;  %v552_v58 = vmul.f32 %v885_v44, %v885_v44 }
 0x157   : > { %v564_v50 = vadd.f32 %v563_v43, %v549_v42  ;;  %v812_v51 = vpack.c.bf16 %v399_v47, %v396_v39  ;;  %v527_v52 = vadd.f32 %v526_v41, %v399_v47  ;;  %v550_v53 = vmul.f32 %v399_v47, %v399_v47 }
 0x158   : > { %841 = vst [vmem:[%s1357_s18 + $0x18] sm:$0xff] %v817_v46   ;;  %845 = vst [vmem:[%s1357_s18 + $0x38] sm:$0xff] %v837_v48   ;;  %v832_v54 = vpack.c.bf16 %v1373_v49, %v1366_v40 }
 0x159   : > { %840 = vst [vmem:[%s1357_s18 + $0x10] sm:$0xff] %v812_v51   ;;  %v528_v56 = vadd.f32 %v884_v36, %v527_v52  ;;  %v565_v57 = vadd.f32 %v564_v50, %v550_v53 }
 0x15a   : > { %844 = vst [vmem:[%s1357_s18 + $0x30] sm:$0xff] %v832_v54  }
 0x15b   : > { %v566_v59 = vadd.f32 %v565_v57, %v551_v55  ;;  %v529_v60 = vadd.f32 %v885_v44, %v528_v56 }
 0x15c   : > { %1063 = shalt.err (!%p1060_p7)
}
 0x15d   : > { %s1064_s29 = scalar_lea.hbm %s1378_s25, 1024  ;;  %s1068_s7 = scalar_lea.hbm %s1486_s2, 4096 }
 0x15e   : > { %p1065_p9 = scmp.ne.s32.totalorder %s1378_s25, %s1064_s29  ;;  %p1069_p5 = scmp.lt.u32.totalorder %s1378_s25, %s1486_s2 }
 0x15f   : > { %p1070_p10 = scmp.lt.u32.totalorder %s1068_s7, %s1064_s29  ;;  %p1072_p4 = scmp.lt.u32.totalorder %s1064_s29, %s1378_s25 }
 0x160   : > { %p1066_p1 = pnand %p1065_p9, %p1268_p12 }
 0x161   : > { %p1071_p2 = por %p1070_p10, %p1069_p5 }
 0x162   : > { %p1067_p0 = pneg %p1066_p1 }
 0x163   : > { %p1073_p6 = por %p1072_p4, %p1071_p2 }
 0x165   : > { %p1074_p8 = pnand %p1073_p6, %p1067_p0 }
 0x167   : > { %1077 = shalt.err (!%p1074_p8)
}
 0x168   : > { %s1159_s18 = smov 64   ;;  %s1160_s8 = smov 4   ;;  %v530_v62 = vadd.f32 %v529_v60, %v1345_v19  ;;  %v567_v63 = vadd.f32 %v566_v59, %v552_v58  ;;  %v554_v2 = vmul.f32 %v1351_v26, %v1351_v26  ;;  %v555_v3 = vmul.f32 %v1343_v17, %v1343_v17 }
 0x169   : > { %916 = dma.vmem_to_hbm [thread:$0]  (%p1268_p12), %s1380_s20, 1024, %s1378_s25, %s584_s5, %s1159_s18, %s1159_s18, %s1160_s8   ;;  %v556_v6 = vmul.f32 %v1347_v21, %v1347_v21  ;;  %v557_v9 = vmul.f32 %v1366_v40, %v1366_v40  ;;  %v558_v14 = vmul.f32 %v1373_v49, %v1373_v49  ;;  %v559_v15 = vmul.f32 %v1363_v38, %v1363_v38 }
 0x16a   : > { %v568_v0 = vadd.f32 %v567_v63, %v553_v61  ;;  %v531_v1 = vadd.f32 %v530_v62, %v1351_v26  ;;  %v560_v18 = vmul.f32 %v1369_v45, %v1369_v45  ;;  %s741_s20 = sshll.u32 %s1319_s6, 1  ;;  %s778_s9 = sshll.u32 %s1203_s16, 5 }
 0x16b   : > { %s214_s4 = scalar_lea.vmem [#allocation8], %s741_s20  ;;  %s1441_s27 = scalar_lea.hbm %s1487_s3, %s778_s9 }
 0x16c   : > { %v532_v4 = vadd.f32 %v1343_v17, %v531_v1  ;;  %v569_v5 = vadd.f32 %v568_v0, %v554_v2  ;;  %s618_s25 = sshll.u32 %s214_s4, 4  ;;  %s589_s28 = scalar_lea.sflag [#allocation9], %s1319_s6  ;;  %s1443_s25 = int_to_ptr.vmem [resolvable:$true] %s618_s25 }
 0x16d   : > { %s1078_s23 = scalar_lea.vmem %s1443_s25, 32  ;;  %s1161_s16 = smov [#allocation8]  }
 0x16e   : > { %v570_v7 = vadd.f32 %v569_v5, %v555_v3  ;;  %v533_v8 = vadd.f32 %v1347_v21, %v532_v4  ;;  %p1079_p11 = scmp.ne.s32.totalorder %s1443_s25, %s1078_s23  ;;  %s1082_s29 = sshll.u32 %s1161_s16, 4  ;;  %s1083_s29 = int_to_ptr.vmem [resolvable:$false] %s1082_s29 }
 0x16f   : > { %s1084_s30 = scalar_lea.vmem %s1083_s29, 64  ;;  %p1085_p7 = scmp.lt.s32.totalorder %s1443_s25, %s1083_s29 }
 0x170   : > { %v534_v10 = vadd.f32 %v533_v8, %v1366_v40  ;;  %v571_v11 = vadd.f32 %v570_v7, %v556_v6  ;;  %p1080_p13 = pnand %p1079_p11, %p1268_p12  ;;  %p1086_p9 = scmp.lt.s32.totalorder %s1084_s30, %s1078_s23 }
 0x172   : > { %v572_v12 = vadd.f32 %v571_v11, %v557_v9  ;;  %v535_v13 = vadd.f32 %v534_v10, %v1373_v49  ;;  %p1081_p3 = pneg %p1080_p13  ;;  %p1087_p1 = por %p1086_p9, %p1085_p7 }
 0x174   : > { %v536_v16 = vadd.f32 %v1363_v38, %v535_v13  ;;  %v573_v17 = vadd.f32 %v572_v12, %v558_v14  ;;  %p1088_p0 = pnand %p1087_p1, %p1081_p3 }
 0x176   : > { %v537_v19 = vadd.f32 %v1369_v45, %v536_v16  ;;  %v574_v20 = vadd.f32 %v573_v17, %v559_v15 }
 0x178   : > { %v538_v21 = vrot.slane %v537_v19, 4  ;;  %v575_v22 = vadd.f32 %v574_v20, %v560_v18 }
 0x17a   : > { %v539_v23 = vadd.f32 %v538_v21, %v537_v19  ;;  %v576_v24 = vrot.slane %v575_v22, 4 }
 0x17c   : > { %v540_v25 = vrot.slane %v539_v23, 2  ;;  %v577_v26 = vadd.f32 %v576_v24, %v575_v22 }
 0x17e   : > { %v541_v27 = vadd.f32 %v540_v25, %v539_v23  ;;  %v578_v28 = vrot.slane %v577_v26, 2 }
 0x180   : > { %v542_v29 = vrot.slane %v541_v27, 1  ;;  %v579_v30 = vadd.f32 %v578_v28, %v577_v26 }
 0x182   : > { %v543_v31 = vadd.f32 %v542_v29, %v541_v27  ;;  %v580_v32 = vrot.slane %v579_v30, 1 }
 0x184   : > { %544 = vst [vmem:[%s214_s4] sm:$0x1] %v543_v31  ;;  %v581_v33 = vadd.f32 %v580_v32, %v579_v30 }
 0x186   : > { %582 = vst [vmem:[%s214_s4 + $0x1] sm:$0x1] %v581_v33 }
 0x187   : > { %1091 = shalt.err (!%p1088_p0)
}
 0x188   : > { %s1092_s6 = scalar_lea.hbm %s1441_s27, 32  ;;  %s1096_s10 = scalar_lea.hbm %s1487_s3, 128 }
 0x189   : > { %p1093_p5 = scmp.ne.s32.totalorder %s1441_s27, %s1092_s6  ;;  %p1097_p4 = scmp.lt.u32.totalorder %s1441_s27, %s1487_s3 }
 0x18a   : > { %p1098_p6 = scmp.lt.u32.totalorder %s1096_s10, %s1092_s6  ;;  %p1100_p11 = scmp.lt.u32.totalorder %s1092_s6, %s1441_s27 }
 0x18b   : > { %p1094_p10 = pnand %p1093_p5, %p1268_p12 }
 0x18c   : > { %p1099_p8 = por %p1098_p6, %p1097_p4 }
 0x18d   : > { %p1095_p2 = pneg %p1094_p10 }
 0x18e   : > { %p1101_p13 = por %p1100_p11, %p1099_p8 }
 0x190   : > { %p1102_p3 = pnand %p1101_p13, %p1095_p2 }
 0x192   : > { %1105 = shalt.err (!%p1102_p3)
}
 0x193   : > { %917 = dma.vmem_to_hbm [thread:$0]  (%p1268_p12), %s1443_s25, 32, %s1441_s27, %s589_s28  }
 0x194 PF: > { %p938_p7 = scmp.ge.s32.totalorder %s1152_s15, 2  ;;  %s630_s8 = sand.u32 1, %s1140_s12  }
 0x195   : > { %p1502_p9 = scmp.ne.s32.totalorder %s1492_s19, 0  ;;  %s631_s20 = scalar_lea.sflag [#allocation4], %s630_s8 }
 0x197   : > { %p929_p1 = pnand %p938_p7, %p1502_p9 }
 0x199   : > { %1131 = dma.done.wait (!%p929_p1), %s631_s20, 1024  }
 0x19a   : > { %1133 = vsyncadd (!%p929_p1), %s631_s20, 4294966272  ;;  %s640_s9 = scalar_lea.sflag [#allocation9], %s630_s8 }
 0x19b   : > { %1135 = dma.done.wait (!%p929_p1), %s640_s9, 32  }
 0x19c   : > { %1137 = vsyncadd (!%p929_p1), %s640_s9, 4294967264  ;;  %p21_p12 = scmp.ge.s32.totalorder %s1235_s24, 6   ;;  %s1503_s12 = smov %s1144_s13 }
 0x19d   : > { %s1504_s13 = smov %s1148_s14  ;;  %s1505_s14 = smov %s1264_s17 }
 0x19e   : > { %s1506_s15 = smov %s1235_s24  ;;  %23 = sbr.rel (!%p21_p12) target bundleno = 8 (0x8), region = 94 }
 0x1a5   :  { %645 = vsyncpa [#allocation3], 1 }
 0x1a6   :  { %647 = vsyncpa [#allocation3 + $0x1], 1 }
 0x1a7   :  { %648 = vsyncpa [#allocation6], 1 }
 0x1a8   :  { %649 = vsyncpa [#allocation4], 1 }
 0x1a9   :  { %651 = vsyncpa [#allocation4 + $0x1], 1 }
 0x1aa   :  { %652 = vsyncpa [#allocation9], 1 }
 0x1ab   :  { %654 = vsyncpa [#allocation9 + $0x1], 1 }

</bundles_post_ra>
